<compile_context>
chip_gen: v6e
topology: v6e:2x2x1
jax: 0.10.0
libtpu: 0.0.40
codegen_flags: <defaults>
</compile_context>

<pallas_src>
import math
import jax
import jax.numpy as jnp
from jax.experimental import pallas as pl
from jax.experimental.pallas import tpu as pltpu

EMBED_DIM = 128


# ----------------------------------------------------------------------------
# fused kernel: attention-pool + fc1 (fc1 folded into the pooling sum)
# ----------------------------------------------------------------------------
def _pred_head_kernel(x_ref, w_ref, b1_ref, o_ref):
    x = x_ref[...].astype(jnp.float32)            # (B, S, D)
    wa = w_ref[0, :].astype(jnp.float32)          # (D,)  attn_vector weight
    w1 = w_ref[1, :].astype(jnp.float32)          # (D,)  fc1 weight

    # Two lane reductions sharing the single x read; keepdims keeps S on the
    # sublane axis (shape (B, S, 1)) -> no lane<->sublane relayout later.
    s = jnp.sum(x * wa, axis=-1, keepdims=True)   # (B, S, 1) attn scores
    y = jnp.sum(x * w1, axis=-1, keepdims=True)   # (B, S, 1) per-token fc1 proj

    # Numerically-stable softmax over the sequence axis (torch softmax(dim=1)).
    # (attn bias omitted: a constant added to every score cancels in softmax.)
    s = s - jnp.max(s, axis=1, keepdims=True)
    p = jnp.exp(s)
    p = p * pl.reciprocal(jnp.sum(p, axis=1, keepdims=True), approx=True)

    # Fused pooling + fc1 via linearity: out_b = sum_s p[b,s]*y[b,s] + b1.
    out = jnp.sum(p * y, axis=1) + b1_ref[0]      # (B, 1)
    o_ref[...] = out.astype(o_ref.dtype)


@jax.jit
def prediction_head(x, params):
    """x: (B, S, D) -> (B, 1), prediction_type='attn_pool'."""
    B = x.shape[0]
    vmem = pl.BlockSpec(memory_space=pltpu.MemorySpace.VMEM)
    smem = pl.BlockSpec(memory_space=pltpu.MemorySpace.SMEM)
    return pl.pallas_call(
        _pred_head_kernel,
        out_shape=jax.ShapeDtypeStruct((B, 1), jnp.float32),
        in_specs=[vmem, vmem, smem],
        out_specs=vmem,
    )(x, params["w"], params["b1"])


# TODO(synk): prediction_type='last' and 'pool' branches are not implemented;
# only the module's default 'attn_pool' path is translated.


# ----------------------------------------------------------------------------
# deterministic parameter init (PyTorch nn.Linear-style uniform)
# ----------------------------------------------------------------------------
def init_params(key, d=EMBED_DIM):
    k1, k2, k3, k4 = jax.random.split(key, 4)
    bound = 1.0 / math.sqrt(d)
    u = lambda k, shape: jax.random.uniform(
        k, shape, minval=-bound, maxval=bound, dtype=jnp.float32)
    wa = u(k1, (d,))        # attn_vector.weight (flattened)
    ba = u(k2, ())          # attn_vector.bias (dead under softmax; ref only)
    w1 = u(k3, (d,))        # fc1.weight (flattened)
    b1 = u(k4, ())          # fc1.bias
    kernel_params = dict(
        w=jnp.stack([wa, w1], axis=0),           # (2, D) coalesced weights
        b1=jnp.reshape(b1, (1,)),                # (1,)   SMEM scalar
    )
    ref_params = dict(wa=wa, ba=ba, w1=w1, b1=b1)
    return kernel_params, ref_params


# ----------------------------------------------------------------------------
if __name__ == "__main__":
    B, S, D = 2, 8, EMBED_DIM

    key = jax.random.PRNGKey(0)
    kx, kp = jax.random.split(key)
    x = jax.random.normal(kx, (B, S, D), dtype=jnp.float32)
    params, ref_params = init_params(kp, D)

    out = jax.block_until_ready(prediction_head(x, params))

    # pure-JAX reference (same semantics as the PyTorch module, incl. attn bias)
    def ref(x, wa, ba, w1, b1):
        s = jnp.sum(x * wa, axis=-1) + ba                   # (B, S)
        p = jax.nn.softmax(s, axis=-1)
        pooled = jnp.sum(p[:, :, None] * x, axis=1)         # (B, D)
        return jnp.sum(pooled * w1, axis=-1, keepdims=True) + b1

    expected = ref(x, ref_params["wa"], ref_params["ba"],
                   ref_params["w1"], ref_params["b1"])

    assert out.shape == (B, 1), out.shape
    assert bool(jnp.all(jnp.isfinite(out)))
    assert bool(jnp.allclose(out, expected, rtol=5e-3, atol=5e-3)), (out, expected)
    print("KERNEL_OK")
</pallas_src>

<mosaic_0001>
module attributes {stable_mosaic.version = 11 : i64} {
  func.func @_pred_head_kernel(%arg0: memref<2x8x128xf32, #tpu.memory_space<vmem>>, %arg1: memref<2x128xf32, #tpu.memory_space<vmem>>, %arg2: memref<1xf32, #tpu.memory_space<smem>>, %arg3: memref<2x1xf32, #tpu.memory_space<vmem>>) attributes {dimension_semantics = [], scalar_prefetch = 0 : i64, scratch_operands = 0 : i64, tpu.core_type = #tpu.core_type<tc>} {
    %c0 = arith.constant 0 : index
    %c0_0 = arith.constant 0 : index
    %c0_1 = arith.constant 0 : index
    %0 = vector.load %arg0[%c0, %c0_0, %c0_1] : memref<2x8x128xf32, #tpu.memory_space<vmem>>, vector<2x8x128xf32>
    %c0_2 = arith.constant 0 : index
    %c0_3 = arith.constant 0 : index
    %1 = vector.load %arg1[%c0_2, %c0_3] : memref<2x128xf32, #tpu.memory_space<vmem>>, vector<1x128xf32>
    %2 = vector.shape_cast %1 : vector<1x128xf32> to vector<128xf32>
    %c1 = arith.constant 1 : index
    %c0_4 = arith.constant 0 : index
    %3 = vector.load %arg1[%c1, %c0_4] : memref<2x128xf32, #tpu.memory_space<vmem>>, vector<1x128xf32>
    %4 = vector.shape_cast %3 : vector<1x128xf32> to vector<128xf32>
    %5 = vector.shape_cast %2 : vector<128xf32> to vector<1x1x128xf32>
    %6 = vector.broadcast %5 : vector<1x1x128xf32> to vector<2x8x128xf32>
    %7 = arith.mulf %0, %6 : vector<2x8x128xf32>
    %cst = arith.constant dense<0.000000e+00> : vector<2x8xf32>
    %8 = vector.multi_reduction <add>, %7, %cst [2] : vector<2x8x128xf32> to vector<2x8xf32>
    %9 = vector.shape_cast %8 : vector<2x8xf32> to vector<2x8x1xf32>
    %10 = vector.shape_cast %4 : vector<128xf32> to vector<1x1x128xf32>
    %11 = vector.broadcast %10 : vector<1x1x128xf32> to vector<2x8x128xf32>
    %12 = arith.mulf %0, %11 : vector<2x8x128xf32>
    %cst_5 = arith.constant dense<0.000000e+00> : vector<2x8xf32>
    %13 = vector.multi_reduction <add>, %12, %cst_5 [2] : vector<2x8x128xf32> to vector<2x8xf32>
    %14 = vector.shape_cast %13 : vector<2x8xf32> to vector<2x8x1xf32>
    %cst_6 = arith.constant dense<0xFF800000> : vector<2x1xf32>
    %15 = vector.multi_reduction <maximumf>, %9, %cst_6 [1] : vector<2x8x1xf32> to vector<2x1xf32>
    %16 = vector.shape_cast %15 : vector<2x1xf32> to vector<2x1x1xf32>
    %17 = vector.broadcast %16 : vector<2x1x1xf32> to vector<2x8x1xf32>
    %18 = arith.subf %9, %17 : vector<2x8x1xf32>
    %19 = math.exp %18 : vector<2x8x1xf32>
    %cst_7 = arith.constant dense<0.000000e+00> : vector<2x1xf32>
    %20 = vector.multi_reduction <add>, %19, %cst_7 [1] : vector<2x8x1xf32> to vector<2x1xf32>
    %21 = vector.shape_cast %20 : vector<2x1xf32> to vector<2x1x1xf32>
    %22 = tpu.reciprocal %21 {approx = true} : vector<2x1x1xf32> -> vector<2x1x1xf32>
    %23 = vector.broadcast %22 : vector<2x1x1xf32> to vector<2x8x1xf32>
    %24 = arith.mulf %19, %23 : vector<2x8x1xf32>
    %25 = arith.mulf %24, %14 : vector<2x8x1xf32>
    %cst_8 = arith.constant dense<0.000000e+00> : vector<2x1xf32>
    %26 = vector.multi_reduction <add>, %25, %cst_8 [1] : vector<2x8x1xf32> to vector<2x1xf32>
    %c0_9 = arith.constant 0 : index
    %27 = memref.load %arg2[%c0_9] : memref<1xf32, #tpu.memory_space<smem>>
    %28 = vector.broadcast %27 : f32 to vector<2x1xf32>
    %29 = arith.addf %26, %28 : vector<2x1xf32>
    %c0_10 = arith.constant 0 : index
    %c0_11 = arith.constant 0 : index
    %30 = vector.load %arg3[%c0_10, %c0_11] : memref<2x1xf32, #tpu.memory_space<vmem>>, vector<2x1xf32>
    tpu.vector_store %arg3[%c0_10, %c0_11], %29 {strides = array<i32>} : memref<2x1xf32, #tpu.memory_space<vmem>>, vector<2x1xf32>,
    return
  }
}

</mosaic_0001>

<bundles_post_ra>
// kernel: prediction_head.1
= control target key start
LH: loop header
LB: loop body
LE: loop exit
PB: predicated region body
PF: predicated region fallthrough
CT: control target
= control target key end

     0   :  { %9 = vsyncpa [#allocation4], 0  ;;  %s152_s12 = smov [#allocation3]   ;;  %s190_s0 = inlined_call_operand.hbm [shape: f32[2,8,128], index: 0, kind: input, shape index: {}]   ;;  %s191_s1 = inlined_call_operand.vmem [shape: f32[2,128], index: 1, kind: input, shape index: {}]   ;;  %s192_s2 = inlined_call_operand.<no memory space> [shape: f32[1], index: 2, kind: input, shape index: {}]   ;;  %s193_s3 = inlined_call_operand.vmem [shape: f32[2,1], index: 3, kind: output, shape index: {}]  }
   0x1   :  { %s15_s13 = sshll.u32 %s152_s12, 4  ;;  %s16_s13 = int_to_ptr.vmem [resolvable:$true] %s15_s13 }
   0x2   :  { %s138_s14 = scalar_lea.vmem %s16_s13, 256  ;;  %p143_p1 = scmp.lt.s32.totalorder %s16_s13, %s16_s13 }
   0x3   :  { %p139_p0 = scmp.ne.s32.totalorder %s16_s13, %s138_s14  ;;  %p144_p2 = scmp.lt.s32.totalorder %s138_s14, %s138_s14 }
   0x5   :  { %p145_p3 = por %p144_p2, %p143_p1 }
   0x7   :  { %p146_p4 = pnand %p145_p3, %p139_p0 }
   0x9   :  { %149 = shalt.err (!%p146_p4)
}
   0xa   :  { %s153_s15 = smov 128   ;;  %s154_s16 = smov 8  }
   0xb   :  { %21 = dma.hbm_to_vmem [thread:$0]  %s190_s0, 256, %s16_s13, [#allocation4], %s153_s15, %s153_s15, %s154_s16  }
   0xc   :  { %150 = dma.done.wait [#allocation4], 256  }
   0xd   :  { %151 = vsyncadd [#allocation4], 4294967040  ;;  %v29_v0 = vld [vmem:[#allocation3] sm:$0xff]  ;;  %v30_v2 = vld [vmem:[#allocation3 + $0x8] sm:$0xff]  ;;  %v102_v59 = vstv %s192_s2  ;;  %vm107_vm0 = vcmask 1041409   ;;  %vm110_vm1 = vcmask 1024  }
   0xe   :  { %v117_v1 = vld [vmem:[%s191_s1] ss:$0 sm:$0xff]  ;;  %v118_v4 = vld [vmem:[%s191_s1 + $0x1] ss:$0 sm:$0xff] }
   0xf   :  { %v37_v3 = vmul.f32 %v117_v1, %v29_v0  ;;  %v47_v5 = vmul.f32 %v118_v4, %v29_v0  ;;  %v38_v6 = vmul.f32 %v117_v1, %v30_v2  ;;  %v48_v7 = vmul.f32 %v118_v4, %v30_v2 }
  0x11   :  { %39 = vadd.xlane.f32.xlu0 %v37_v3  ;;  %49 = vadd.xlane.f32.xlu1 %v47_v5 }
  0x15   :  { %41 = vadd.xlane.f32.xlu0 %v38_v6  ;;  %51 = vadd.xlane.f32.xlu1 %v48_v7 }
  0x9a   :  { %v40_v8 = vpop.xlane.xlu0 %39  ;;  %v50_v40 = vpop.xlane.xlu1 %49 }
  0x9b   :  { %v53_v9 = vrot.slane %v40_v8, 4 }
  0x9d   :  { %v54_v10 = vmax.f32 %v40_v8, %v53_v9 }
  0x9e   :  { %v42_v11 = vpop.xlane.xlu0 %41  ;;  %v52_v45 = vpop.xlane.xlu1 %51 }
  0x9f   :  { %v55_v12 = vrot.slane %v54_v10, 2  ;;  %v59_v13 = vrot.slane %v42_v11, 4 }
  0xa1   :  { %v56_v14 = vmax.f32 %v54_v10, %v55_v12  ;;  %v60_v15 = vmax.f32 %v42_v11, %v59_v13 }
  0xa3   :  { %v57_v16 = vrot.slane %v56_v14, 1  ;;  %v61_v17 = vrot.slane %v60_v15, 2 }
  0xa5   :  { %v58_v18 = vmax.f32 %v56_v14, %v57_v16  ;;  %v62_v19 = vmax.f32 %v60_v15, %v61_v17 }
  0xa7   :  { %v65_v20 = vsub.f32 %v40_v8, %v58_v18  ;;  %v63_v21 = vrot.slane %v62_v19, 1 }
  0xa9   :  { %v67_v22 = vmul.f32 1.442695, %v65_v20  ;;  %v64_v23 = vmax.f32 %v62_v19, %v63_v21 }
  0xab   :  { %122 = vpow2.f32 %v67_v22  ;;  %v66_v24 = vsub.f32 %v42_v11, %v64_v23 }
  0xad   :  { %v69_v25 = vmul.f32 1.442695, %v66_v24 }
  0xaf   :  { %124 = vpow2.f32 %v69_v25 }
  0xb8   :  { %v123_v26 = vpop.eup %122 }
  0xb9   :  { %v71_v27 = vrot.slane %v123_v26, 4 }
  0xbb   :  { %v72_v28 = vadd.f32 %v123_v26, %v71_v27 }
  0xbc   :  { %v125_v29 = vpop.eup %124 }
  0xbd   :  { %v73_v30 = vrot.slane %v72_v28, 2  ;;  %v77_v31 = vrot.slane %v125_v29, 4 }
  0xbf   :  { %v74_v32 = vadd.f32 %v73_v30, %v72_v28  ;;  %v78_v33 = vadd.f32 %v125_v29, %v77_v31 }
  0xc1   :  { %v75_v34 = vrot.slane %v74_v32, 1  ;;  %v79_v35 = vrot.slane %v78_v33, 2 }
  0xc3   :  { %v76_v36 = vadd.f32 %v75_v34, %v74_v32  ;;  %v80_v37 = vadd.f32 %v79_v35, %v78_v33 }
  0xc5   :  { %126 = vrcp.f32 %v76_v36  ;;  %v81_v38 = vrot.slane %v80_v37, 1 }
  0xc7   :  { %v82_v39 = vadd.f32 %v81_v38, %v80_v37 }
  0xc9   :  { %128 = vrcp.f32 %v82_v39 }
  0xd2   :  { %v127_v41 = vpop.eup %126 }
  0xd3   :  { %v85_v42 = vmul.f32 %v127_v41, %v123_v26 }
  0xd5   :  { %v87_v43 = vmul.f32 %v85_v42, %v50_v40 }
  0xd6   :  { %v129_v44 = vpop.eup %128 }
  0xd7   :  { %v89_v46 = vrot.slane %v87_v43, 4  ;;  %v86_v47 = vmul.f32 %v129_v44, %v125_v29 }
  0xd9   :  { %v90_v48 = vadd.f32 %v89_v46, %v87_v43  ;;  %v88_v49 = vmul.f32 %v86_v47, %v52_v45 }
  0xdb   :  { %v91_v50 = vrot.slane %v90_v48, 2  ;;  %v95_v51 = vrot.slane %v88_v49, 4 }
  0xdd   :  { %v92_v52 = vadd.f32 %v91_v50, %v90_v48  ;;  %v96_v53 = vadd.f32 %v95_v51, %v88_v49 }
  0xdf   :  { %v93_v54 = vrot.slane %v92_v52, 1  ;;  %v97_v55 = vrot.slane %v96_v53, 2 }
  0xe1   :  { %v98_v56 = vadd.f32 %v97_v55, %v96_v53  ;;  %v94_v57 = vadd.f32 %v93_v54, %v92_v52 }
  0xe3   :  { %v99_v58 = vrot.slane %v98_v56, 1  ;;  %v103_v61 = vadd.f32 %v102_v59, %v94_v57 }
  0xe5   :  { %v100_v60 = vadd.f32 %v99_v58, %v98_v56 }
  0xe7   :  { %v104_v62 = vadd.f32 %v102_v59, %v100_v60 }
  0xe9   :  { %v108_v63 = vsel %vm107_vm0, %v104_v62, %v103_v61 }
  0xea   :  { %111 = vst.msk [vmem:[%s193_s3] sm:$0x3] %vm110_vm1, %v108_v63 }
  0xeb   :  { %116 = vsyncpa [#allocation4], 1 }

</bundles_post_ra>
